<compile_context>
chip_gen: v5e
topology: v5e:2x2
jax: 0.10.0
libtpu: 0.0.40
codegen_flags: <defaults>
</compile_context>

<pallas_src>
import functools

import jax
import jax.numpy as jnp
from jax.experimental import pallas as pl
from jax.experimental.pallas import tpu as pltpu

_LANE = 128


def _round_up(v, m):
    return ((v + m - 1) // m) * m


def _mlp_kernel(x_ref, w1_ref, b1_ref, w2_ref, b2_ref, o_ref):
    # Hidden layer: bf16 matmul on the MXU, f32 accumulate; bias + ReLU on VPU.
    h = jnp.dot(x_ref[...], w1_ref[...], preferred_element_type=jnp.float32)
    h = jnp.maximum(h + b1_ref[...], 0.0)
    # Output layer: cast activations to bf16 for the MXU, accumulate in f32.
    y = jnp.dot(h.astype(w2_ref.dtype), w2_ref[...],
                preferred_element_type=jnp.float32)
    o_ref[...] = (y + b2_ref[...]).astype(o_ref.dtype)


def prepare_params(w1, b1, w2, b2):
    """Pad / cast params ONCE (outside the per-call path).

    w1: [F, H], b1: [1, H], w2: [H, O], b2: [1, O]  (stored as [in, out],
    i.e. PyTorch W.T, so y = x @ W + b).
    Padded hidden units get bias 0 -> relu(0) = 0 and zero W2 rows, so they
    contribute exactly nothing to the real outputs.
    """
    f, h = w1.shape
    o = w2.shape[1]
    h_pad = _round_up(max(h, _LANE), _LANE)
    w1p = jnp.zeros((f, h_pad), jnp.bfloat16).at[:, :h].set(w1.astype(jnp.bfloat16))
    b1p = jnp.zeros((1, h_pad), jnp.float32).at[:, :h].set(b1.astype(jnp.float32))
    w2p = jnp.zeros((h_pad, o), jnp.bfloat16).at[:h, :].set(w2.astype(jnp.bfloat16))
    b2p = b2.astype(jnp.float32).reshape(1, o)
    return w1p, b1p, w2p, b2p


@functools.partial(jax.jit, static_argnames=("block_m",))
def net_forward(x, w1p, b1p, w2p, b2p, *, block_m=1024):
    """Forward pass of Net. x: [N, F] f32; params from prepare_params().

    Returns [N, O] float32 logits.
    """
    n, f = x.shape
    h_pad = w1p.shape[1]
    o = w2p.shape[1]

    # Keep block_m a multiple of 8 and ensure the grid has >= 2 steps (so the
    # batch axis can be sharded across v7x's 2 TensorCores) without inflating
    # n_pad for small batches.  Stays well below v5e/v7x scoped-VMEM limits.
    block_m = max(8, min(block_m, _round_up(pl.cdiv(n, 2), 8)))
    n_pad = _round_up(n, block_m)

    # Only x is padded per call (rows n..n_pad produce garbage logits that are
    # sliced away below).
    xp = jnp.zeros((n_pad, f), jnp.bfloat16).at[:n, :].set(x.astype(jnp.bfloat16))

    grid = (n_pad // block_m,)
    cost = pl.CostEstimate(
        flops=2 * n_pad * (f * h_pad + h_pad * o),
        transcendentals=0,
        bytes_accessed=(n_pad * f * 2          # x (bf16)
                        + n_pad * o * 4        # out (f32)
                        + f * h_pad * 2 + h_pad * 4   # w1 + b1
                        + h_pad * o * 2 + o * 4),     # w2 + b2
    )

    out_padded = pl.pallas_call(
        _mlp_kernel,
        out_shape=jax.ShapeDtypeStruct((n_pad, o), jnp.float32),
        grid_spec=pltpu.PrefetchScalarGridSpec(
            num_scalar_prefetch=0,
            grid=grid,
            in_specs=[
                # x: tiled over the batch axis -> auto double-buffered pipeline.
                pl.BlockSpec((block_m, f), lambda i: (i, 0)),
                # Weights / biases: same block every step -> VMEM-resident.
                pl.BlockSpec((f, h_pad), lambda i: (0, 0)),
                pl.BlockSpec((1, h_pad), lambda i: (0, 0)),
                pl.BlockSpec((h_pad, o), lambda i: (0, 0)),
                pl.BlockSpec((1, o), lambda i: (0, 0)),
            ],
            # Last dim == full array dim (O), so no 128-lane padding needed.
            out_specs=pl.BlockSpec((block_m, o), lambda i: (i, 0)),
        ),
        compiler_params=pltpu.CompilerParams(
            # Independent batch tiles -> shard across v7x's 2 TensorCores.
            dimension_semantics=("parallel",),
        ),
        cost_estimate=cost,
    )(xp, w1p, b1p, w2p, b2p)

    return out_padded[:n, :]


def init_params(key, n_feature, n_hidden, n_output):
    """Deterministic init mimicking PyTorch nn.Linear default U[-1/sqrt(fan_in), +]."""
    k1, k2, k3, k4 = jax.random.split(key, 4)
    lim1 = 1.0 / jnp.sqrt(n_feature)
    lim2 = 1.0 / jnp.sqrt(n_hidden)
    w1 = jax.random.uniform(k1, (n_feature, n_hidden), jnp.float32, -lim1, lim1)
    b1 = jax.random.uniform(k2, (1, n_hidden), jnp.float32, -lim1, lim1)
    w2 = jax.random.uniform(k3, (n_hidden, n_output), jnp.float32, -lim2, lim2)
    b2 = jax.random.uniform(k4, (1, n_output), jnp.float32, -lim2, lim2)
    return w1, b1, w2, b2


if __name__ == "__main__":
    # Net(n_feature=2, n_hidden=10, n_output=2) with the tutorial's two-cluster
    # dataset: 100 samples around +2 and 100 around -2 (N = 200).
    n_feature, n_hidden, n_output = 2, 10, 2
    n_per_class = 100

    key = jax.random.PRNGKey(0)
    k_d0, k_d1, k_params = jax.random.split(key, 3)

    x0 = 2.0 + jax.random.normal(k_d0, (n_per_class, n_feature), jnp.float32)
    x1 = -2.0 + jax.random.normal(k_d1, (n_per_class, n_feature), jnp.float32)
    x = jnp.concatenate([x0, x1], axis=0)  # [200, 2]

    w1, b1, w2, b2 = init_params(k_params, n_feature, n_hidden, n_output)

    # Pad / cast the parameters once, outside the per-call path.
    w1p, b1p, w2p, b2p = prepare_params(w1, b1, w2, b2)

    # block_m auto-caps to ~N/2 here -> a 2-step grid, exercising the pipelined
    # (and v7x dual-TC) path even at this small demo size.
    out = net_forward(x, w1p, b1p, w2p, b2p)
    jax.block_until_ready(out)

    # Reference in plain f32 JAX; bf16 matmul inputs => relaxed tolerance.
    ref = jnp.maximum(x @ w1 + b1, 0.0) @ w2 + b2
    assert out.shape == (2 * n_per_class, n_output)
    assert jnp.allclose(out, ref, atol=5e-2, rtol=5e-2), (
        float(jnp.max(jnp.abs(out - ref))))

    print("KERNEL_OK")
</pallas_src>

<mosaic_0001>
module attributes {stable_mosaic.version = 11 : i64} {
  func.func @_mlp_kernel(%arg0: i32, %arg1: memref<104x2xbf16, #tpu.memory_space<vmem>>, %arg2: memref<2x128xbf16, #tpu.memory_space<vmem>>, %arg3: memref<1x128xf32, #tpu.memory_space<vmem>>, %arg4: memref<128x2xbf16, #tpu.memory_space<vmem>>, %arg5: memref<1x2xf32, #tpu.memory_space<vmem>>, %arg6: memref<104x2xf32, #tpu.memory_space<vmem>>) attributes {dimension_semantics = [#tpu.dimension_semantics<parallel>], iteration_bounds = array<i64: 2>, scalar_prefetch = 0 : i64, scratch_operands = 0 : i64, tpu.core_type = #tpu.core_type<tc>, window_params = [{transform_indices = @transform_0, window_bounds = array<i64: 104, 2>}, {pipeline_mode = #tpu.pipeline_mode<synchronous>, transform_indices = @transform_1, window_bounds = array<i64: 2, 128>}, {pipeline_mode = #tpu.pipeline_mode<synchronous>, transform_indices = @transform_2, window_bounds = array<i64: 1, 128>}, {pipeline_mode = #tpu.pipeline_mode<synchronous>, transform_indices = @transform_3, window_bounds = array<i64: 128, 2>}, {pipeline_mode = #tpu.pipeline_mode<synchronous>, transform_indices = @transform_4, window_bounds = array<i64: 1, 2>}, {transform_indices = @transform_5, window_bounds = array<i64: 104, 2>}]} {
    %c0 = arith.constant 0 : index
    %c0_0 = arith.constant 0 : index
    %0 = vector.load %arg1[%c0, %c0_0] : memref<104x2xbf16, #tpu.memory_space<vmem>>, vector<104x2xbf16>
    %c0_1 = arith.constant 0 : index
    %c0_2 = arith.constant 0 : index
    %1 = vector.load %arg2[%c0_1, %c0_2] : memref<2x128xbf16, #tpu.memory_space<vmem>>, vector<2x128xbf16>
    %cst = arith.constant dense<0.000000e+00> : vector<104x128xf32>
    %2 = tpu.matmul %0, %1, %cst {dimension_numbers = #tpu.dot_dimension_numbers<[1], [0], [0], [1], [0, 0, 1, 1], [], []>} : vector<104x2xbf16>, vector<2x128xbf16>, vector<104x128xf32> -> vector<104x128xf32>
    %c0_3 = arith.constant 0 : index
    %c0_4 = arith.constant 0 : index
    %3 = vector.load %arg3[%c0_3, %c0_4] : memref<1x128xf32, #tpu.memory_space<vmem>>, vector<1x128xf32>
    %4 = vector.broadcast %3 : vector<1x128xf32> to vector<104x128xf32>
    %5 = arith.addf %2, %4 : vector<104x128xf32>
    %cst_5 = arith.constant 0.000000e+00 : f32
    %6 = vector.broadcast %cst_5 : f32 to vector<104x128xf32>
    %7 = arith.maximumf %5, %6 : vector<104x128xf32>
    %8 = arith.truncf %7 : vector<104x128xf32> to vector<104x128xbf16>
    %c0_6 = arith.constant 0 : index
    %c0_7 = arith.constant 0 : index
    %9 = vector.load %arg4[%c0_6, %c0_7] : memref<128x2xbf16, #tpu.memory_space<vmem>>, vector<128x2xbf16>
    %cst_8 = arith.constant dense<0.000000e+00> : vector<104x2xf32>
    %10 = tpu.matmul %8, %9, %cst_8 {dimension_numbers = #tpu.dot_dimension_numbers<[1], [0], [0], [1], [0, 0, 1, 1], [], []>} : vector<104x128xbf16>, vector<128x2xbf16>, vector<104x2xf32> -> vector<104x2xf32>
    %c0_9 = arith.constant 0 : index
    %c0_10 = arith.constant 0 : index
    %11 = vector.load %arg5[%c0_9, %c0_10] : memref<1x2xf32, #tpu.memory_space<vmem>>, vector<1x2xf32>
    %12 = vector.broadcast %11 : vector<1x2xf32> to vector<104x2xf32>
    %13 = arith.addf %10, %12 : vector<104x2xf32>
    %c0_11 = arith.constant 0 : index
    %c0_12 = arith.constant 0 : index
    %14 = vector.load %arg6[%c0_11, %c0_12] : memref<104x2xf32, #tpu.memory_space<vmem>>, vector<104x2xf32>
    tpu.vector_store %arg6[%c0_11, %c0_12], %13 {strides = array<i32>} : memref<104x2xf32, #tpu.memory_space<vmem>>, vector<104x2xf32>,
    return
  }
  func.func @transform_0(%arg0: i32) -> (i32, i32) {
    %c0_i32 = arith.constant 0 : i32
    %c0_i32_0 = arith.constant 0 : i32
    return %arg0, %c0_i32 : i32, i32
  }
  func.func @transform_1(%arg0: i32) -> (i32, i32) {
    %c0_i32 = arith.constant 0 : i32
    %c0_i32_0 = arith.constant 0 : i32
    %c0_i32_1 = arith.constant 0 : i32
    return %c0_i32, %c0_i32_0 : i32, i32
  }
  func.func @transform_2(%arg0: i32) -> (i32, i32) {
    %c0_i32 = arith.constant 0 : i32
    %c0_i32_0 = arith.constant 0 : i32
    %c0_i32_1 = arith.constant 0 : i32
    return %c0_i32, %c0_i32_0 : i32, i32
  }
  func.func @transform_3(%arg0: i32) -> (i32, i32) {
    %c0_i32 = arith.constant 0 : i32
    %c0_i32_0 = arith.constant 0 : i32
    %c0_i32_1 = arith.constant 0 : i32
    return %c0_i32, %c0_i32_0 : i32, i32
  }
  func.func @transform_4(%arg0: i32) -> (i32, i32) {
    %c0_i32 = arith.constant 0 : i32
    %c0_i32_0 = arith.constant 0 : i32
    %c0_i32_1 = arith.constant 0 : i32
    return %c0_i32, %c0_i32_0 : i32, i32
  }
  func.func @transform_5(%arg0: i32) -> (i32, i32) {
    %c0_i32 = arith.constant 0 : i32
    %c0_i32_0 = arith.constant 0 : i32
    return %arg0, %c0_i32 : i32, i32
  }
}

</mosaic_0001>

<bundles_post_ra>
// kernel: net_forward.1
= control target key start
LH: loop header
LB: loop body
LE: loop exit
PB: predicated region body
PF: predicated region fallthrough
CT: control target
= control target key end

     0   :  { %s700_s18 = smov 0   ;;  %s798_s0 = inlined_call_operand.vmem [shape: bf16[208,2], index: 0, kind: input, shape index: {}]   ;;  %s799_s1 = inlined_call_operand.vmem [shape: bf16[2,128], index: 1, kind: input, shape index: {}]   ;;  %s800_s2 = inlined_call_operand.vmem [shape: f32[1,128], index: 2, kind: input, shape index: {}]   ;;  %s801_s3 = inlined_call_operand.vmem [shape: bf16[128,2], index: 3, kind: input, shape index: {}]   ;;  %s802_s4 = inlined_call_operand.vmem [shape: f32[1,2], index: 4, kind: input, shape index: {}]   ;;  %s803_s5 = inlined_call_operand.vmem [shape: f32[208,2], index: 5, kind: output, shape index: {}]  }
   0x1 LB: > { %s549_s19 = sadd.s32 4294967295, %s668_s18   ;;  %p553_p0 = scmp.ge.s32.totalorder %s668_s18, 1  ;;  %s668_s18 = sphi %s700_s18, %s15_s18  }
   0x2   : > { %p188_p1 = scmp.lt.s32.totalorder %s668_s18, 3 }
   0x4   : > { %p189_p2 = pnand %p553_p0, %p188_p1 }
   0x5   : > { %s216_s22 = smul.u32 (!%p189_p2), 13, %s549_s19 }
   0x6   : > { %192 = sbr.rel (%p189_p2) target bundleno = 379 (0x17b), region = 40 }
   0x7   : > { %p217_p3 = scmp.lt.s32.totalorder (!%p189_p2), %s216_s22, 25 }
   0xb   : > { %v242_v0 = vld [vmem:[%s799_s1] sm:$0x1]  ;;  %vm302_vm0 = vcmask 1040384   ;;  %s805_s22 = smov (!%p217_p3, %s216_s22), 25  ;;  %vm280_vm1 = vcmask 15360   ;;  %v634_v7 = vld [vmem:[%s801_s3 + $0x38] sm:$0xff] }
   0xc   : > { %v304_v1 = vsel %vm302_vm0, %v242_v0, 0  ;;  %s554_s23 = sshll.u32 %s805_s22, 2  ;;  %437 = vmatpush.bf16.msra.mxu1 %v634_v7  ;;  %v633_v9 = vld [vmem:[%s801_s3 + $0x30] sm:$0xff]  ;;  %636 = vmatpush.bf16.msra.mxu2 %v634_v7  ;;  %v632_v11 = vld [vmem:[%s801_s3 + $0x28] sm:$0xff]  ;;  %v631_v12 = vld [vmem:[%s801_s3 + $0x20] sm:$0xff]  ;;  %s555_s21 = sshll.u32 %s805_s22, 3 }
   0xd   : > { %313 = vmatpush.bf16.msra.mxu0 %v304_v1  ;;  %635 = vmatpush.bf16.msra.mxu3 %v304_v1  ;;  %s717_s26 = scalar_lea.vmem %s798_s0, %s554_s23  ;;  %v630_v15 = vld [vmem:[%s801_s3 + $0x18] sm:$0xff]  ;;  %v629_v16 = vld [vmem:[%s801_s3 + $0x10] sm:$0xff]  ;;  %v628_v17 = vld [vmem:[%s801_s3 + $0x8] sm:$0xff]  ;;  %s767_s27 = scalar_lea.vmem %s803_s5, %s555_s21 }
   0xe   : > { %v621_v2 = vld [vmem:[%s717_s26] sm:$0xff]  ;;  %v622_v3 = vld [vmem:[%s717_s26 + $0x8] sm:$0xff]  ;;  %v623_v5 = vld [vmem:[%s717_s26 + $0x10] sm:$0xff] }
   0xf   : > { %v626_v4 = vld [vmem:[%s717_s26 + $0x28] sm:$0xff]  ;;  %v241_v6 = vld [vmem:[%s717_s26 + $0x30] sm:$0xf]  ;;  %v624_v13 = vld [vmem:[%s717_s26 + $0x18] sm:$0xff] }
  0x10   : > { %580 = vmatmul.msk.bf16.vlgmr.msra.gmra.mxu0 %vm280_vm1, %v621_v2  ;;  %585 = vmatmul.msk.bf16.vlgmr.msra.gmra.mxu3 %vm280_vm1, %v626_v4  ;;  %v272_v8 = vunpack.c.l.b16 %v241_v6  ;;  %v625_v14 = vld [vmem:[%s717_s26 + $0x20] sm:$0xff] }
  0x11   : > { %637 = vmatpush.bf16.msrb.mxu3 %v634_v7  ;;  %438 = vmatpush.bf16.msra.mxu1 %v633_v9  ;;  %v627_v18 = vld [vmem:[%s801_s3] sm:$0xff] }
  0x12   : > { %v279_v10 = vpack.c.b16 %v272_v8, %v272_v8  ;;  %638 = vmatpush.bf16.msra.mxu2 %v633_v9  ;;  %v660_v20 = vld [vmem:[%s800_s2] ss:$0 sm:$0xff] }
  0x15   : > { %639 = vmatpush.bf16.msrb.mxu3 %v633_v9  ;;  %439 = vmatpush.bf16.msra.mxu1 %v632_v11 }
  0x16   : > { %640 = vmatpush.bf16.msra.mxu2 %v632_v11 }
  0x19   : > { %641 = vmatpush.bf16.msrb.mxu3 %v632_v11  ;;  %440 = vmatpush.bf16.msra.mxu1 %v631_v12 }
  0x1a   : > { %642 = vmatpush.bf16.msra.mxu2 %v631_v12 }
  0x1d   : > { %643 = vmatpush.bf16.msrb.mxu3 %v631_v12  ;;  %441 = vmatpush.bf16.msra.mxu1 %v630_v15 }
  0x1e   : > { %644 = vmatpush.bf16.msra.mxu2 %v630_v15 }
  0x20   : > { %581 = vmatmul.msk.bf16.gmra.mxu0 %vm280_vm1, %v622_v3  ;;  %586 = vmatmul.msk.bf16.gmra.mxu3 %vm280_vm1, %v279_v10  ;;  %v661_v3 = vld [vmem:[%s802_s4] ss:$0 sm:$0xff] }
  0x21   : > { %645 = vmatpush.bf16.msrb.mxu3 %v630_v15  ;;  %442 = vmatpush.bf16.msra.mxu1 %v629_v16 }
  0x22   : > { %646 = vmatpush.bf16.msra.mxu2 %v629_v16 }
  0x25   : > { %647 = vmatpush.bf16.msrb.mxu3 %v629_v16  ;;  %443 = vmatpush.bf16.msra.mxu1 %v628_v17 }
  0x26   : > { %648 = vmatpush.bf16.msra.mxu2 %v628_v17 }
  0x29   : > { %649 = vmatpush.bf16.msrb.mxu3 %v628_v17  ;;  %444 = vmatpush.bf16.msra.mxu1 %v627_v18 }
  0x2a   : > { %650 = vmatpush.bf16.msra.mxu2 %v627_v18 }
  0x2d   : > { %651 = vmatpush.bf16.msrb.mxu3 %v627_v18 }
  0x30   : > { %582 = vmatmul.msk.bf16.gmra.mxu0 %vm280_vm1, %v623_v5 }
  0x40   : > { %583 = vmatmul.msk.bf16.gmra.mxu0 %vm280_vm1, %v624_v13 }
  0x50   : > { %584 = vmatmul.msk.bf16.gmra.mxu0 %vm280_vm1, %v625_v14 }
  0x8d   : > { %v315_v19 = vpop.f32.mrf.mxu0 }
  0x8e   : > { %v316_v21 = vadd.f32 %v660_v20, %v315_v19 }
  0x90   : > { %v349_v24 = vmax.f32 %v316_v21, 0.0 }
  0x93   : > { %v340_v35 = vpop.f32.mrf.mxu3 }
  0x94   : > { %v341_v62 = vadd.f32 %v660_v20, %v340_v35 }
  0x95   : > { %v317_v22 = vpop.f32.mrf.mxu0 }
  0x96   : > { %v318_v23 = vadd.f32 %v660_v20, %v317_v22  ;;  %v359_v0 = vmax.f32 %v341_v62, 0.0 }
  0x98   : > { %v350_v25 = vmax.f32 %v318_v23, 0.0 }
  0x9a   : > { %v362_v26 = vpack.c.bf16 %v350_v25, %v349_v24 }
  0x9b   : > { %v342_v41 = vpop.f32.mrf.mxu3 }
  0x9c   : > { %445 = vmatmul.bf16.vlgmr.msra.gmra.mxu1 %v362_v26  ;;  %v343_v63 = vadd.f32 %v660_v20, %v342_v41 }
  0x9d   : > { %v320_v27 = vpop.f32.mrf.mxu0 }
  0x9e   : > { %v321_v28 = vadd.f32 %v660_v20, %v320_v27  ;;  %v360_v1 = vmax.f32 %v343_v63, 0.0 }
  0xa0   : > { %v351_v31 = vmax.f32 %v321_v28, 0.0  ;;  %v367_v2 = vpack.c.bf16 %v360_v1, %v359_v0 }
  0xa3   : > { %v345_v44 = vpop.f32.mrf.mxu3 }
  0xa4   : > { %v346_v45 = vadd.f32 %v660_v20, %v345_v44 }
  0xa5   : > { %v322_v29 = vpop.f32.mrf.mxu0 }
  0xa6   : > { %v323_v30 = vadd.f32 %v660_v20, %v322_v29  ;;  %v361_v46 = vmax.f32 %v346_v45, 0.0 }
  0xa8   : > { %v352_v32 = vmax.f32 %v323_v30, 0.0  ;;  %v368_v49 = vpack.c.bf16 %v361_v46, %v361_v46 }
  0xaa   : > { %v363_v33 = vpack.c.bf16 %v352_v32, %v351_v31  ;;  %475 = vmatmul.bf16.vlgmr.msrb.gmra.mxu3 %v368_v49 }
  0xab   : > { %v347_v53 = vpop.f32.mrf.mxu3 }
  0xac   : > { %450 = vmatmul.bf16.gmra.mxu1 %v363_v33 }
  0xad   : > { %v325_v34 = vpop.f32.mrf.mxu0 }
  0xae   : > { %v326_v36 = vadd.f32 %v660_v20, %v325_v34 }
  0xb0   : > { %v353_v39 = vmax.f32 %v326_v36, 0.0 }
  0xb5   : > { %v327_v37 = vpop.f32.mrf.mxu0 }
  0xb6   : > { %v328_v38 = vadd.f32 %v660_v20, %v327_v37 }
  0xb8   : > { %v354_v40 = vmax.f32 %v328_v38, 0.0 }
  0xba   : > { %v364_v42 = vpack.c.bf16 %v354_v40, %v353_v39 }
  0xbc   : > { %455 = vmatmul.bf16.gmra.mxu1 %v364_v42 }
  0xbd   : > { %v330_v43 = vpop.f32.mrf.mxu0 }
  0xbe   : > { %v331_v47 = vadd.f32 %v660_v20, %v330_v43 }
  0xc0   : > { %v355_v51 = vmax.f32 %v331_v47, 0.0 }
  0xc5   : > { %v332_v48 = vpop.f32.mrf.mxu0 }
  0xc6   : > { %v333_v50 = vadd.f32 %v660_v20, %v332_v48 }
  0xc8   : > { %v356_v52 = vmax.f32 %v333_v50, 0.0 }
  0xca   : > { %v365_v54 = vpack.c.bf16 %v356_v52, %v355_v51 }
  0xcc   : > { %460 = vmatmul.bf16.vlgmr.msra.gmra.mxu2 %v365_v54 }
  0xcd   : > { %v335_v55 = vpop.f32.mrf.mxu0 }
  0xce   : > { %v336_v56 = vadd.f32 %v660_v20, %v335_v55 }
  0xd0   : > { %v357_v59 = vmax.f32 %v336_v56, 0.0 }
  0xd5   : > { %v337_v57 = vpop.f32.mrf.mxu0 }
  0xd6   : > { %v338_v58 = vadd.f32 %v660_v20, %v337_v57 }
  0xd8   : > { %v358_v60 = vmax.f32 %v338_v58, 0.0 }
  0xda   : > { %v366_v61 = vpack.c.bf16 %v358_v60, %v357_v59 }
  0xdc   : > { %465 = vmatmul.bf16.gmra.mxu2 %v366_v61 }
  0xec   : > { %470 = vmatmul.bf16.gmra.mxu2 %v367_v2 }
 0x119   : > { %v446_v4 = vpop.f32.mrf.mxu1 }
 0x11a   : > { %v447_v5 = vadd.f32 %v661_v3, %v446_v4 }
 0x11c   : > { %480 = vst.msk [vmem:[%s767_s27] sm:$0xff] %vm280_vm1, %v447_v5 }
 0x121   : > { %v448_v6 = vpop.f32.mrf.mxu1 }
 0x122   : > { %v449_v7 = vadd.f32 %v661_v3, %v448_v6 }
 0x124   : > { %481 = vst.msk [vmem:[%s767_s27 + $0x8] sm:$0xff] %vm280_vm1, %v449_v7 }
 0x129   : > { %v451_v8 = vpop.f32.mrf.mxu1 }
 0x12a   : > { %v452_v9 = vadd.f32 %v661_v3, %v451_v8 }
 0x12c   : > { %482 = vst.msk [vmem:[%s767_s27 + $0x10] sm:$0xff] %vm280_vm1, %v452_v9 }
 0x12d   : > { %v476_v16 = vpop.f32.mrf.mxu3 }
 0x12e   : > { %v477_v17 = vadd.f32 %v661_v3, %v476_v16 }
 0x130   : > { %492 = vst.msk [vmem:[%s767_s27 + $0x60] sm:$0xff] %vm280_vm1, %v477_v17 }
 0x131   : > { %v453_v10 = vpop.f32.mrf.mxu1 }
 0x132   : > { %v454_v11 = vadd.f32 %v661_v3, %v453_v10 }
 0x134   : > { %483 = vst.msk [vmem:[%s767_s27 + $0x18] sm:$0xff] %vm280_vm1, %v454_v11 }
 0x135   : > { %v478_v20 = vpop.f32.mrf.mxu3 }
 0x139   : > { %v456_v12 = vpop.f32.mrf.mxu1 }
 0x13a   : > { %v457_v13 = vadd.f32 %v661_v3, %v456_v12 }
 0x13c   : > { %484 = vst.msk [vmem:[%s767_s27 + $0x20] sm:$0xff] %vm280_vm1, %v457_v13 }
 0x141   : > { %v458_v14 = vpop.f32.mrf.mxu1 }
 0x142   : > { %v459_v15 = vadd.f32 %v661_v3, %v458_v14 }
 0x144   : > { %485 = vst.msk [vmem:[%s767_s27 + $0x28] sm:$0xff] %vm280_vm1, %v459_v15 }
 0x14f   : > { %v461_v18 = vpop.f32.mrf.mxu2 }
 0x150   : > { %v462_v19 = vadd.f32 %v661_v3, %v461_v18 }
 0x152   : > { %486 = vst.msk [vmem:[%s767_s27 + $0x30] sm:$0xff] %vm280_vm1, %v462_v19 }
 0x157   : > { %v463_v21 = vpop.f32.mrf.mxu2 }
 0x158   : > { %v464_v22 = vadd.f32 %v661_v3, %v463_v21 }
 0x15a   : > { %487 = vst.msk [vmem:[%s767_s27 + $0x38] sm:$0xff] %vm280_vm1, %v464_v22 }
 0x15f   : > { %v466_v23 = vpop.f32.mrf.mxu2 }
 0x160   : > { %v467_v24 = vadd.f32 %v661_v3, %v466_v23 }
 0x162   : > { %488 = vst.msk [vmem:[%s767_s27 + $0x40] sm:$0xff] %vm280_vm1, %v467_v24 }
 0x167   : > { %v468_v25 = vpop.f32.mrf.mxu2 }
 0x168   : > { %v469_v26 = vadd.f32 %v661_v3, %v468_v25 }
 0x16a   : > { %489 = vst.msk [vmem:[%s767_s27 + $0x48] sm:$0xff] %vm280_vm1, %v469_v26 }
 0x16f   : > { %v471_v27 = vpop.f32.mrf.mxu2 }
 0x170   : > { %v472_v28 = vadd.f32 %v661_v3, %v471_v27 }
 0x172   : > { %490 = vst.msk [vmem:[%s767_s27 + $0x50] sm:$0xff] %vm280_vm1, %v472_v28 }
 0x177   : > { %v473_v29 = vpop.f32.mrf.mxu2 }
 0x178   : > { %v474_v30 = vadd.f32 %v661_v3, %v473_v29 }
 0x17a   : > { %491 = vst.msk [vmem:[%s767_s27 + $0x58] sm:$0xff] %vm280_vm1, %v474_v30 }
 0x17b PF: > { %s15_s18 = sadd.s32 1, %s668_s18  }
 0x17c   : > { %p12_p4 = scmp.ge.s32.totalorder %s15_s18, 4  }
 0x17e   :  { %14 = sbr.rel (!%p12_p4) target bundleno = 1 (0x1), region = 70 }

</bundles_post_ra>
